<compile_context>
chip_gen: v6e
topology: v6e:2x2x1
jax: 0.10.0
libtpu: 0.0.40
codegen_flags: <defaults>
</compile_context>

<pallas_src>
import jax
import jax.numpy as jnp
from jax.experimental import pallas as pl
from jax.experimental.pallas import tpu as pltpu

NUM_EMBEDDINGS = 5
EMBED_DIM = 128 * 30 * 2 * 2          # 15360
LANE = 128
SUBLANE_ROWS = EMBED_DIM // LANE      # 120


def _make_gather_kernel(tb: int):
    def kernel(ids_ref, emb_ref, o_ref):
        # ids_ref: SMEM int32[padded_B]       (scalar prefetch)
        # emb_ref: VMEM f32[5, 120, 128]      (full table, resident across grid)
        # o_ref  : VMEM f32[tb, 120, 128]     (tb output rows of this step)
        base = pl.program_id(0) * tb
        for r in range(tb):  # static, fully unrolled row gather from VMEM
            o_ref[r] = emb_ref[ids_ref[base + r]]
    return kernel


def text_encoder_forward(ids: jax.Array, emb_weight: jax.Array, *, tb: int | None = None) -> jax.Array:
    """ids: int[B]; emb_weight: float32[5, 15360] -> float32[B, 128, 30, 2, 2]."""
    B = ids.shape[0]
    if tb is None:
        # Rows per grid step: amortize per-step overhead without over-padding
        # small batches. 64 * 60 KiB output tile (double-buffered) + 300 KiB
        # resident table stays far below even v7x's scoped-VMEM default.
        tb = max(1, min(64, B))

    emb3d = emb_weight.reshape(NUM_EMBEDDINGS, SUBLANE_ROWS, LANE)

    # Clamp ids for bounds safety (PyTorch raises on OOB; we clamp instead).
    ids32 = jnp.clip(ids.astype(jnp.int32), 0, NUM_EMBEDDINGS - 1)

    num_blocks = pl.cdiv(B, tb)
    padded_B = num_blocks * tb
    if padded_B != B:
        ids32 = jnp.pad(ids32, (0, padded_B - B))  # pad rows gather row 0, sliced off later

    grid_spec = pltpu.PrefetchScalarGridSpec(
        num_scalar_prefetch=1,
        grid=(num_blocks,),
        in_specs=[
            # Whole table as one block with a constant index_map -> DMA'd once,
            # stays resident in VMEM for all grid steps.
            pl.BlockSpec((NUM_EMBEDDINGS, SUBLANE_ROWS, LANE),
                         lambda i, ids: (0, 0, 0)),
        ],
        # Lane-dense output tile (last dim = 128) -> unmasked stores / clean DMA.
        out_specs=pl.BlockSpec((tb, SUBLANE_ROWS, LANE),
                               lambda i, ids: (i, 0, 0)),
    )

    out = pl.pallas_call(
        _make_gather_kernel(tb),
        out_shape=jax.ShapeDtypeStruct((padded_B, SUBLANE_ROWS, LANE), emb_weight.dtype),
        grid_spec=grid_spec,
        compiler_params=pltpu.CompilerParams(
            # Independent output tiles per step -> safe to shard across
            # TensorCores on v7x; neutral on v5e/v6e.
            dimension_semantics=("parallel",),
        ),
    )(ids32, emb3d)

    if padded_B != B:
        out = out[:B]

    # view(B, 128, 30, 2, 2): pure row-major reshape, same element order as PyTorch.
    return out.reshape(B, 128, 30, 2, 2)


if __name__ == "__main__":
    key = jax.random.PRNGKey(0)
    k_w, k_ids = jax.random.split(key)

    # Deterministic "checkpoint": nn.Embedding default init ~ N(0, 1)
    emb_weight = jax.random.normal(k_w, (NUM_EMBEDDINGS, EMBED_DIM), dtype=jnp.float32)

    # Small batch of token ids in [0, 5)
    B = 2
    ids = jax.random.randint(k_ids, (B,), 0, NUM_EMBEDDINGS, dtype=jnp.int32)

    out = text_encoder_forward(ids, emb_weight)
    out = jax.block_until_ready(out)

    # Sanity check against plain-JAX reference (embedding lookup + reshape)
    ref = emb_weight[ids].reshape(B, 128, 30, 2, 2)
    assert out.shape == (B, 128, 30, 2, 2), out.shape
    assert jnp.array_equal(out, ref), "mismatch vs reference"

    print("KERNEL_OK")
</pallas_src>

<mosaic_0001>
module attributes {stable_mosaic.version = 11 : i64} {
  func.func @kernel(%arg0: i32, %arg1: memref<2xi32, #tpu.memory_space<smem>>, %arg2: memref<5x120x128xf32, #tpu.memory_space<vmem>>, %arg3: memref<2x120x128xf32, #tpu.memory_space<vmem>>) attributes {dimension_semantics = [#tpu.dimension_semantics<parallel>], iteration_bounds = array<i64: 1>, scalar_prefetch = 1 : i64, scratch_operands = 0 : i64, tpu.core_type = #tpu.core_type<tc>, window_params = [{pipeline_mode = #tpu.pipeline_mode<synchronous>, transform_indices = @transform_0, window_bounds = array<i64: 5, 120, 128>}, {transform_indices = @transform_1, window_bounds = array<i64: 2, 120, 128>}]} {
    %c2_i32 = arith.constant 2 : i32
    %0 = arith.muli %arg0, %c2_i32 : i32
    %c0_i32 = arith.constant 0 : i32
    %1 = arith.addi %0, %c0_i32 : i32
    %2 = arith.index_cast %1 : i32 to index
    %3 = memref.load %arg1[%2] : memref<2xi32, #tpu.memory_space<smem>>
    %4 = arith.index_cast %3 : i32 to index
    %c0 = arith.constant 0 : index
    %c0_0 = arith.constant 0 : index
    %5 = vector.load %arg2[%4, %c0, %c0_0] : memref<5x120x128xf32, #tpu.memory_space<vmem>>, vector<1x120x128xf32>
    %6 = vector.shape_cast %5 : vector<1x120x128xf32> to vector<120x128xf32>
    %c0_1 = arith.constant 0 : index
    %c0_2 = arith.constant 0 : index
    %c0_3 = arith.constant 0 : index
    %7 = vector.load %arg3[%c0_1, %c0_2, %c0_3] : memref<2x120x128xf32, #tpu.memory_space<vmem>>, vector<1x120x128xf32>
    %8 = vector.shape_cast %7 : vector<1x120x128xf32> to vector<120x128xf32>
    %9 = vector.shape_cast %6 : vector<120x128xf32> to vector<1x120x128xf32>
    tpu.vector_store %arg3[%c0_1, %c0_2, %c0_3], %9 {strides = array<i32>} : memref<2x120x128xf32, #tpu.memory_space<vmem>>, vector<1x120x128xf32>,
    %c1_i32 = arith.constant 1 : i32
    %10 = arith.addi %0, %c1_i32 : i32
    %11 = arith.index_cast %10 : i32 to index
    %12 = memref.load %arg1[%11] : memref<2xi32, #tpu.memory_space<smem>>
    %13 = arith.index_cast %12 : i32 to index
    %c0_4 = arith.constant 0 : index
    %c0_5 = arith.constant 0 : index
    %14 = vector.load %arg2[%13, %c0_4, %c0_5] : memref<5x120x128xf32, #tpu.memory_space<vmem>>, vector<1x120x128xf32>
    %15 = vector.shape_cast %14 : vector<1x120x128xf32> to vector<120x128xf32>
    %c1 = arith.constant 1 : index
    %c0_6 = arith.constant 0 : index
    %c0_7 = arith.constant 0 : index
    %16 = vector.load %arg3[%c1, %c0_6, %c0_7] : memref<2x120x128xf32, #tpu.memory_space<vmem>>, vector<1x120x128xf32>
    %17 = vector.shape_cast %16 : vector<1x120x128xf32> to vector<120x128xf32>
    %18 = vector.shape_cast %15 : vector<120x128xf32> to vector<1x120x128xf32>
    tpu.vector_store %arg3[%c1, %c0_6, %c0_7], %18 {strides = array<i32>} : memref<2x120x128xf32, #tpu.memory_space<vmem>>, vector<1x120x128xf32>,
    return
  }
  func.func @transform_0(%arg0: i32, %arg1: memref<2xi32, #tpu.memory_space<smem>>) -> (i32, i32, i32) {
    %c0_i32 = arith.constant 0 : i32
    %c0_i32_0 = arith.constant 0 : i32
    %c0_i32_1 = arith.constant 0 : i32
    %c0_i32_2 = arith.constant 0 : i32
    return %c0_i32, %c0_i32_0, %c0_i32_1 : i32, i32, i32
  }
  func.func @transform_1(%arg0: i32, %arg1: memref<2xi32, #tpu.memory_space<smem>>) -> (i32, i32, i32) {
    %c0_i32 = arith.constant 0 : i32
    %c0_i32_0 = arith.constant 0 : i32
    %c0_i32_1 = arith.constant 0 : i32
    return %arg0, %c0_i32, %c0_i32_0 : i32, i32, i32
  }
}

</mosaic_0001>

<bundles_post_ra>
// kernel: tpu_custom_call.1
= control target key start
LH: loop header
LB: loop body
LE: loop exit
PB: predicated region body
PF: predicated region fallthrough
CT: control target
= control target key end

     0   :  { %s178_s9 = smov [#allocation3]   ;;  %s218_s0 = inlined_call_operand.hbm [shape: s32[2], index: 0, kind: input, shape index: {}]   ;;  %s219_s1 = inlined_call_operand.hbm [shape: f32[5,120,128], index: 1, kind: input, shape index: {}]   ;;  %s220_s2 = inlined_call_operand.hbm [shape: f32[2,120,128], index: 2, kind: output, shape index: {}]  }
   0x1   :  { %8 = dma.hbm_to_smem %s218_s0, 16, %s178_s9, [#allocation2] }
   0x2   :  { %172 = dma.done.wait [#allocation2], 16 }
   0x3   :  { %173 = vsyncadd [#allocation2], 4294967280 }
   0x4   :  { %10 = sfence }
   0x5   :  { %11 = vsyncpa [#allocation5], 0 }
   0x6   :  { %12 = vsyncpa [#allocation6], 0  ;;  %s179_s12 = smov [#allocation4]  }
   0x7   :  { %s18_s13 = sshll.u32 %s179_s12, 4  ;;  %s19_s13 = int_to_ptr.vmem [resolvable:$true] %s18_s13 }
   0x8   :  { %s140_s14 = scalar_lea.vmem %s19_s13, 9600  ;;  %p145_p1 = scmp.lt.s32.totalorder %s19_s13, %s19_s13 }
   0x9   :  { %p141_p0 = scmp.ne.s32.totalorder %s19_s13, %s140_s14  ;;  %p146_p2 = scmp.lt.s32.totalorder %s140_s14, %s140_s14 }
   0xb   :  { %p147_p3 = por %p146_p2, %p145_p1 }
   0xd   :  { %p148_p4 = pnand %p147_p3, %p141_p0 }
   0xf   :  { %151 = shalt.err (!%p148_p4)
}
  0x10   :  { %s180_s15 = smov 128   ;;  %s181_s16 = smov 8  }
  0x11   :  { %24 = dma.hbm_to_vmem [thread:$0]  %s219_s1, 9600, %s19_s13, [#allocation5], %s180_s15, %s180_s15, %s181_s16  }
  0x12   :  { %174 = dma.done.wait [#allocation5], 9600  }
  0x13   :  { %175 = vsyncadd [#allocation5], 4294957696  ;;  %s29_s18 = sld [smem:[#allocation3]]  ;;  %s182_s23 = smov [#allocation7]  }
  0x14   :  { %s207_s19 = sld [smem:[#allocation3 + $0x1]]  ;;  %s102_s24 = sshll.u32 %s182_s23, 4  ;;  %s103_s24 = int_to_ptr.vmem [resolvable:$true] %s102_s24 }
  0x15   :  { %s152_s25 = scalar_lea.vmem %s103_s24, 3840  ;;  %p157_p6 = scmp.lt.s32.totalorder %s103_s24, %s103_s24 }
  0x16   :  { %p153_p5 = scmp.ne.s32.totalorder %s103_s24, %s152_s25  ;;  %p158_p7 = scmp.lt.s32.totalorder %s152_s25, %s152_s25 }
  0x18   :  { %p159_p8 = por %p158_p7, %p157_p6 }
  0x19   :  { %s30_s20 = smul.u32 120, %s29_s18 }
  0x1a   :  { %s64_s21 = smul.u32 120, %s207_s19  ;;  %p160_p9 = pnand %p159_p8, %p153_p5 }
  0x1b   :  { %s31_s22 = scalar_lea.vmem [#allocation4], %s30_s20 }
  0x1c   :  { %v32_v0 = vld [vmem:[%s31_s22] sm:$0xff]  ;;  %v33_v1 = vld [vmem:[%s31_s22 + $0x8] sm:$0xff]  ;;  %v34_v2 = vld [vmem:[%s31_s22 + $0x10] sm:$0xff]  ;;  %s65_s1 = scalar_lea.vmem [#allocation4], %s64_s21 }
  0x1d   :  { %47 = vst [vmem:[#allocation7] sm:$0xff] %v32_v0  ;;  %48 = vst [vmem:[#allocation7 + $0x8] sm:$0xff] %v33_v1  ;;  %v35_v3 = vld [vmem:[%s31_s22 + $0x18] sm:$0xff]  ;;  %v36_v4 = vld [vmem:[%s31_s22 + $0x20] sm:$0xff] }
  0x1e   :  { %49 = vst [vmem:[#allocation7 + $0x10] sm:$0xff] %v34_v2  ;;  %v37_v5 = vld [vmem:[%s31_s22 + $0x28] sm:$0xff]  ;;  %50 = vst [vmem:[#allocation7 + $0x18] sm:$0xff] %v35_v3  ;;  %v38_v6 = vld [vmem:[%s31_s22 + $0x30] sm:$0xff] }
  0x1f   :  { %51 = vst [vmem:[#allocation7 + $0x20] sm:$0xff] %v36_v4  ;;  %52 = vst [vmem:[#allocation7 + $0x28] sm:$0xff] %v37_v5  ;;  %v39_v7 = vld [vmem:[%s31_s22 + $0x38] sm:$0xff]  ;;  %v40_v8 = vld [vmem:[%s31_s22 + $0x40] sm:$0xff] }
  0x20   :  { %53 = vst [vmem:[#allocation7 + $0x30] sm:$0xff] %v38_v6  ;;  %54 = vst [vmem:[#allocation7 + $0x38] sm:$0xff] %v39_v7  ;;  %v41_v9 = vld [vmem:[%s31_s22 + $0x48] sm:$0xff]  ;;  %v42_v10 = vld [vmem:[%s31_s22 + $0x50] sm:$0xff] }
  0x21   :  { %55 = vst [vmem:[#allocation7 + $0x40] sm:$0xff] %v40_v8  ;;  %v43_v11 = vld [vmem:[%s31_s22 + $0x58] sm:$0xff]  ;;  %56 = vst [vmem:[#allocation7 + $0x48] sm:$0xff] %v41_v9  ;;  %v44_v12 = vld [vmem:[%s31_s22 + $0x60] sm:$0xff] }
  0x22   :  { %57 = vst [vmem:[#allocation7 + $0x50] sm:$0xff] %v42_v10  ;;  %58 = vst [vmem:[#allocation7 + $0x58] sm:$0xff] %v43_v11  ;;  %v45_v13 = vld [vmem:[%s31_s22 + $0x68] sm:$0xff]  ;;  %v46_v14 = vld [vmem:[%s31_s22 + $0x70] sm:$0xff] }
  0x23   :  { %59 = vst [vmem:[#allocation7 + $0x60] sm:$0xff] %v44_v12  ;;  %60 = vst [vmem:[#allocation7 + $0x68] sm:$0xff] %v45_v13  ;;  %v66_v15 = vld [vmem:[%s65_s1] sm:$0xff]  ;;  %v67_v16 = vld [vmem:[%s65_s1 + $0x8] sm:$0xff] }
  0x24   :  { %61 = vst [vmem:[#allocation7 + $0x70] sm:$0xff] %v46_v14  ;;  %v68_v17 = vld [vmem:[%s65_s1 + $0x10] sm:$0xff]  ;;  %82 = vst [vmem:[#allocation7 + $0x78] sm:$0xff] %v66_v15  ;;  %v69_v18 = vld [vmem:[%s65_s1 + $0x18] sm:$0xff] }
  0x25   :  { %83 = vst [vmem:[#allocation7 + $0x80] sm:$0xff] %v67_v16  ;;  %84 = vst [vmem:[#allocation7 + $0x88] sm:$0xff] %v68_v17  ;;  %v70_v19 = vld [vmem:[%s65_s1 + $0x20] sm:$0xff]  ;;  %v71_v20 = vld [vmem:[%s65_s1 + $0x28] sm:$0xff] }
  0x26   :  { %85 = vst [vmem:[#allocation7 + $0x90] sm:$0xff] %v69_v18  ;;  %86 = vst [vmem:[#allocation7 + $0x98] sm:$0xff] %v70_v19  ;;  %v72_v21 = vld [vmem:[%s65_s1 + $0x30] sm:$0xff]  ;;  %v73_v22 = vld [vmem:[%s65_s1 + $0x38] sm:$0xff] }
  0x27   :  { %87 = vst [vmem:[#allocation7 + $0xa0] sm:$0xff] %v71_v20  ;;  %v74_v23 = vld [vmem:[%s65_s1 + $0x40] sm:$0xff]  ;;  %88 = vst [vmem:[#allocation7 + $0xa8] sm:$0xff] %v72_v21  ;;  %v75_v24 = vld [vmem:[%s65_s1 + $0x48] sm:$0xff] }
  0x28   :  { %89 = vst [vmem:[#allocation7 + $0xb0] sm:$0xff] %v73_v22  ;;  %90 = vst [vmem:[#allocation7 + $0xb8] sm:$0xff] %v74_v23  ;;  %v76_v25 = vld [vmem:[%s65_s1 + $0x50] sm:$0xff]  ;;  %v77_v26 = vld [vmem:[%s65_s1 + $0x58] sm:$0xff] }
  0x29   :  { %91 = vst [vmem:[#allocation7 + $0xc0] sm:$0xff] %v75_v24  ;;  %92 = vst [vmem:[#allocation7 + $0xc8] sm:$0xff] %v76_v25  ;;  %v78_v27 = vld [vmem:[%s65_s1 + $0x60] sm:$0xff]  ;;  %v79_v28 = vld [vmem:[%s65_s1 + $0x68] sm:$0xff] }
  0x2a   :  { %93 = vst [vmem:[#allocation7 + $0xd0] sm:$0xff] %v77_v26  ;;  %v80_v29 = vld [vmem:[%s65_s1 + $0x70] sm:$0xff]  ;;  %94 = vst [vmem:[#allocation7 + $0xd8] sm:$0xff] %v78_v27 }
  0x2b   :  { %95 = vst [vmem:[#allocation7 + $0xe0] sm:$0xff] %v79_v28  ;;  %96 = vst [vmem:[#allocation7 + $0xe8] sm:$0xff] %v80_v29 }
  0x2c   :  { %163 = shalt.err (!%p160_p9)
}
  0x2d   :  { %108 = dma.vmem_to_hbm [thread:$0]  %s103_s24, 3840, %s220_s2, [#allocation6], %s180_s15, %s180_s15, %s181_s16  }
  0x2e   :  { %176 = dma.done.wait [#allocation6], 3840  }
  0x2f   :  { %177 = vsyncadd [#allocation6], 4294963456 }
  0x30   :  { %112 = vsyncpa [#allocation5], 1 }
  0x31   :  { %113 = vsyncpa [#allocation6], 1 }

</bundles_post_ra>
